<compile_context>
chip_gen: v7x
topology: tpu7x:2x2x1
jax: 0.10.0
libtpu: 0.0.40
codegen_flags: <defaults>
</compile_context>

<pallas_src>
import functools
import math

import jax
import jax.numpy as jnp
from jax.experimental import pallas as pl
from jax.experimental.pallas import tpu as pltpu


def _charbonnier_block_kernel(pred_ref, targ_ref, w_ref, out_ref, *,
                              eps_sq, rows, tm, needs_mask):
    diff = pred_ref[...].astype(jnp.float32) - targ_ref[...].astype(jnp.float32)
    pen = jnp.sqrt(diff * diff + eps_sq)
    if needs_mask:
        # Partial last row-tile: zero rows past the logical end.  Everything is
        # static except program_id; garbage in the edge-padded region cannot
        # leak because jnp.where selects 0.0 for invalid rows.
        valid_rows = rows - pl.program_id(0) * tm
        row_ids = jax.lax.broadcasted_iota(jnp.int32, (tm, 1), 0)
        pen = jnp.where(row_ids < valid_rows, pen, 0.0)
    # Fold rows first (VALU adds), apply the (1, W) weight row once, then a
    # single lane reduce -> this block's partial weighted sum.
    col = jnp.sum(pen, axis=0, keepdims=True)
    s = jnp.sum(col * w_ref[...])
    out_ref[...] = jnp.broadcast_to(s, out_ref.shape).astype(out_ref.dtype)


def _vmem_budget_bytes():
    """Returns (input-block budget, vmem_limit_bytes) sized per TPU generation."""
    cap = 64 * 1024 * 1024                      # conservative default: v7x per-TC VMEM
    try:
        info = pltpu.get_tpu_info()
        c = getattr(info, "vmem_capacity_bytes", None)
        if c:
            cap = int(c)
    except Exception:
        pass
    if cap >= 100 * 1024 * 1024:                # v5e / v6e: 128 MiB VMEM
        return 48 * 1024 * 1024, 64 * 1024 * 1024
    return 22 * 1024 * 1024, 32 * 1024 * 1024   # v7x: 64 MiB VMEM, 32 MiB scoped


def charbonnier_loss_weighted(prediction: jax.Array,
                              target: jax.Array,
                              epsilon: float = 0.001,
                              forecast_steps: int = 12) -> jax.Array:
    assert prediction.shape == target.shape
    assert prediction.shape[-1] == forecast_steps, (
        "last axis must equal forecast_steps (trailing-dim broadcast, as in PyTorch)")

    T = int(forecast_steps)
    eps_sq = float(epsilon) ** 2

    # Lane-dense width: smallest common multiple of T and 128.
    W = T * 128 // math.gcd(T, 128)

    n_elems = int(math.prod(prediction.shape))
    rows = n_elems // W
    body = rows * W
    tail = n_elems - body                       # < W; always a multiple of T

    weights_t = jnp.linspace(1.0, 0.1, T, dtype=jnp.float32)
    flat_p = prediction.reshape(-1)
    flat_t = target.reshape(-1)

    total = jnp.float32(0.0)

    if rows > 0:
        itemsize = max(prediction.dtype.itemsize, target.dtype.itemsize)
        block_budget, vmem_limit = _vmem_budget_bytes()
        # 2 inputs x 2 pipeline buffers of (tm, W) must fit the block budget.
        tm_cap = max(8, (block_budget // (4 * W * itemsize)) // 8 * 8)
        tm = rows if rows <= tm_cap else tm_cap          # single block may equal full dims
        n_blocks = -(-rows // tm)
        needs_mask = (rows % tm) != 0

        # Copy-free when n_elems % W == 0 (the prefix slice is the identity and
        # the reshape is a bitcast); otherwise the slice costs one body copy.
        # TODO(synk): fully copy-free unaligned path via manual DMA from a flat
        # pl.ANY ref if the unaligned case ever matters.
        pred2d = flat_p[:body].reshape(rows, W)
        targ2d = flat_t[:body].reshape(rows, W)
        w_row = jnp.tile(weights_t, W // T).reshape(1, W)

        kernel = functools.partial(_charbonnier_block_kernel, eps_sq=eps_sq,
                                   rows=rows, tm=tm, needs_mask=needs_mask)

        out = pl.pallas_call(
            kernel,
            out_shape=jax.ShapeDtypeStruct((n_blocks, 8, 128), jnp.float32),
            grid_spec=pltpu.PrefetchScalarGridSpec(
                num_scalar_prefetch=0,
                grid=(n_blocks,),
                in_specs=[
                    pl.BlockSpec((tm, W), lambda i: (i, 0)),
                    pl.BlockSpec((tm, W), lambda i: (i, 0)),
                    pl.BlockSpec((1, W), lambda i: (0, 0)),
                ],
                out_specs=pl.BlockSpec((1, 8, 128), lambda i: (i, 0, 0)),
            ),
            compiler_params=pltpu.CompilerParams(
                dimension_semantics=("parallel",),
                vmem_limit_bytes=vmem_limit,
            ),
        )(pred2d, targ2d, w_row)

        total = jnp.sum(out[:, 0, 0])

    if tail > 0:
        # < W leftover elements (only when n_elems is not a multiple of W).
        # The tail starts at a multiple of T, so the weight pattern restarts.
        d = flat_p[body:].astype(jnp.float32) - flat_t[body:].astype(jnp.float32)
        w_tail = jnp.tile(weights_t, tail // T)
        total = total + jnp.sum(jnp.sqrt(d * d + eps_sq) * w_tail)

    return total / jnp.float32(n_elems)


def _reference(prediction, target, epsilon=0.001, forecast_steps=12):
    diff = prediction.astype(jnp.float32) - target.astype(jnp.float32)
    weights = jnp.linspace(1.0, 0.1, forecast_steps, dtype=jnp.float32)
    loss = jnp.sqrt(diff * diff + epsilon ** 2) * weights
    return jnp.mean(loss)


if __name__ == "__main__":
    # Small deterministic inputs: (B, C, H, T) with T == forecast_steps.
    B, C, H, T = 2, 4, 16, 12
    key = jax.random.PRNGKey(0)
    k1, k2 = jax.random.split(key)
    prediction = jax.random.normal(k1, (B, C, H, T), dtype=jnp.float32)
    target = jax.random.normal(k2, (B, C, H, T), dtype=jnp.float32)

    loss = charbonnier_loss_weighted(prediction, target,
                                     epsilon=0.001, forecast_steps=T)
    loss = jax.block_until_ready(loss)

    ref = _reference(prediction, target, epsilon=0.001, forecast_steps=T)
    assert jnp.allclose(loss, ref, rtol=1e-5, atol=1e-5), (loss, ref)

    print("KERNEL_OK")
</pallas_src>

<mosaic_0001>
module attributes {stable_mosaic.version = 11 : i64} {
  func.func @_charbonnier_block_kernel(%arg0: i32, %arg1: memref<4x384xf32, #tpu.memory_space<vmem>>, %arg2: memref<4x384xf32, #tpu.memory_space<vmem>>, %arg3: memref<1x384xf32, #tpu.memory_space<vmem>>, %arg4: memref<1x8x128xf32, #tpu.memory_space<vmem>>) attributes {dimension_semantics = [#tpu.dimension_semantics<parallel>], iteration_bounds = array<i64: 1>, scalar_prefetch = 0 : i64, scratch_operands = 0 : i64, tpu.core_type = #tpu.core_type<tc>, window_params = [{transform_indices = @transform_0, window_bounds = array<i64: 4, 384>}, {transform_indices = @transform_1, window_bounds = array<i64: 4, 384>}, {pipeline_mode = #tpu.pipeline_mode<synchronous>, transform_indices = @transform_2, window_bounds = array<i64: 1, 384>}, {transform_indices = @transform_3, window_bounds = array<i64: 1, 8, 128>}]} {
    %c0 = arith.constant 0 : index
    %c0_0 = arith.constant 0 : index
    %0 = vector.load %arg1[%c0, %c0_0] : memref<4x384xf32, #tpu.memory_space<vmem>>, vector<4x384xf32>
    %c0_1 = arith.constant 0 : index
    %c0_2 = arith.constant 0 : index
    %1 = vector.load %arg2[%c0_1, %c0_2] : memref<4x384xf32, #tpu.memory_space<vmem>>, vector<4x384xf32>
    %2 = arith.subf %0, %1 : vector<4x384xf32>
    %3 = arith.mulf %2, %2 : vector<4x384xf32>
    %cst = arith.constant 9.99999997E-7 : f32
    %4 = vector.broadcast %cst : f32 to vector<4x384xf32>
    %5 = arith.addf %3, %4 : vector<4x384xf32>
    %6 = math.sqrt %5 : vector<4x384xf32>
    %cst_3 = arith.constant dense<0.000000e+00> : vector<384xf32>
    %7 = vector.multi_reduction <add>, %6, %cst_3 [0] : vector<4x384xf32> to vector<384xf32>
    %8 = vector.shape_cast %7 : vector<384xf32> to vector<1x384xf32>
    %c0_4 = arith.constant 0 : index
    %c0_5 = arith.constant 0 : index
    %9 = vector.load %arg3[%c0_4, %c0_5] : memref<1x384xf32, #tpu.memory_space<vmem>>, vector<1x384xf32>
    %10 = arith.mulf %8, %9 : vector<1x384xf32>
    %11 = vector.shape_cast %10 : vector<1x384xf32> to vector<1x1x384xf32>
    %cst_6 = arith.constant dense<0.000000e+00> : vector<1xf32>
    %12 = vector.multi_reduction <add>, %11, %cst_6 [1, 2] : vector<1x1x384xf32> to vector<1xf32>
    %13 = vector.shape_cast %12 : vector<1xf32> to vector<1x1x1xf32>
    %14 = vector.extract %13[0, 0, 0] : f32 from vector<1x1x1xf32>
    %15 = vector.broadcast %14 : f32 to vector<1x8x128xf32>
    %c0_7 = arith.constant 0 : index
    %c0_8 = arith.constant 0 : index
    %c0_9 = arith.constant 0 : index
    %16 = vector.load %arg4[%c0_7, %c0_8, %c0_9] : memref<1x8x128xf32, #tpu.memory_space<vmem>>, vector<1x8x128xf32>
    tpu.vector_store %arg4[%c0_7, %c0_8, %c0_9], %15 {strides = array<i32>} : memref<1x8x128xf32, #tpu.memory_space<vmem>>, vector<1x8x128xf32>,
    return
  }
  func.func @transform_0(%arg0: i32) -> (i32, i32) {
    %c0_i32 = arith.constant 0 : i32
    %c0_i32_0 = arith.constant 0 : i32
    return %arg0, %c0_i32 : i32, i32
  }
  func.func @transform_1(%arg0: i32) -> (i32, i32) {
    %c0_i32 = arith.constant 0 : i32
    %c0_i32_0 = arith.constant 0 : i32
    return %arg0, %c0_i32 : i32, i32
  }
  func.func @transform_2(%arg0: i32) -> (i32, i32) {
    %c0_i32 = arith.constant 0 : i32
    %c0_i32_0 = arith.constant 0 : i32
    %c0_i32_1 = arith.constant 0 : i32
    return %c0_i32, %c0_i32_0 : i32, i32
  }
  func.func @transform_3(%arg0: i32) -> (i32, i32, i32) {
    %c0_i32 = arith.constant 0 : i32
    %c0_i32_0 = arith.constant 0 : i32
    %c0_i32_1 = arith.constant 0 : i32
    return %arg0, %c0_i32, %c0_i32_0 : i32, i32, i32
  }
}

</mosaic_0001>

<bundles_post_ra>
// kernel: tpu_custom_call.1
= control target key start
LH: loop header
LB: loop body
LE: loop exit
PB: predicated region body
PF: predicated region fallthrough
CT: control target
= control target key end

     0   :  { %8 = vsyncpa [#allocation3], 0  ;;  %s284_s0 = inlined_call_operand.hbm [shape: f32[4,384], index: 0, kind: input, shape index: {}]   ;;  %s285_s1 = inlined_call_operand.hbm [shape: f32[4,384], index: 1, kind: input, shape index: {}]   ;;  %s286_s2 = inlined_call_operand.vmem [shape: f32[1,384], index: 2, kind: input, shape index: {}]   ;;  %s287_s3 = inlined_call_operand.hbm [shape: f32[1,8,128], index: 3, kind: output, shape index: {}]  }
   0x1   :  { %9 = vsyncpa [#allocation6], 0 }
   0x2   :  { %10 = vsyncpa [#allocation4], 0  ;;  %s222_s12 = smov [#allocation2]   ;;  %s223_s14 = smov [#allocation5]  }
   0x3   :  { %s17_s13 = sshll.u32 %s222_s12, 4  ;;  %s27_s15 = sshll.u32 %s223_s14, 4  ;;  %s18_s13 = int_to_ptr.vmem [resolvable:$true] %s17_s13  ;;  %s28_s15 = int_to_ptr.vmem [resolvable:$true] %s27_s15 }
   0x4   :  { %s150_s18 = scalar_lea.hbm %s284_s0, 192 }
   0x5   :  { %p151_p0 = scmp.ne.s32.totalorder %s284_s0, %s150_s18  ;;  %p154_p1 = scmp.lt.u32.totalorder %s150_s18, %s284_s0 }
   0x7   :  { %p156_p2 = pnand %p154_p1, %p151_p0 }
   0x9   :  { %159 = shalt.err (!%p156_p2)
}
   0xa   :  { %s160_s23 = scalar_lea.vmem %s18_s13, 192  ;;  %p165_p4 = scmp.lt.s32.totalorder %s18_s13, %s18_s13 }
   0xb   :  { %p161_p3 = scmp.ne.s32.totalorder %s18_s13, %s160_s23  ;;  %p166_p5 = scmp.lt.s32.totalorder %s160_s23, %s160_s23 }
   0xd   :  { %p167_p6 = por %p166_p5, %p165_p4 }
   0xf   :  { %p168_p7 = pnand %p167_p6, %p161_p3 }
  0x11   :  { %171 = shalt.err (!%p168_p7)
}
  0x12   :  { %20 = dma.hbm_to_vmem [thread:$0]  %s284_s0, 192, %s18_s13, [#allocation3]  }
  0x13   :  { %s172_s28 = scalar_lea.hbm %s285_s1, 192 }
  0x14   :  { %p173_p8 = scmp.ne.s32.totalorder %s285_s1, %s172_s28  ;;  %p176_p9 = scmp.lt.u32.totalorder %s172_s28, %s285_s1 }
  0x16   :  { %p178_p10 = pnand %p176_p9, %p173_p8 }
  0x18   :  { %181 = shalt.err (!%p178_p10)
}
  0x19   :  { %s182_s6 = scalar_lea.vmem %s28_s15, 192  ;;  %p187_p12 = scmp.lt.s32.totalorder %s28_s15, %s28_s15 }
  0x1a   :  { %p183_p11 = scmp.ne.s32.totalorder %s28_s15, %s182_s6  ;;  %p188_p13 = scmp.lt.s32.totalorder %s182_s6, %s182_s6 }
  0x1c   :  { %p189_p0 = por %p188_p13, %p187_p12 }
  0x1e   :  { %p190_p1 = pnand %p189_p0, %p183_p11 }
  0x20   :  { %193 = shalt.err (!%p190_p1)
}
  0x21   :  { %30 = dma.hbm_to_vmem [thread:$0]  %s285_s1, 192, %s28_s15, [#allocation6]  }
  0x22   :  { %216 = dma.done.wait [#allocation3], 192  }
  0x23   :  { %217 = vsyncadd [#allocation3], 4294967104 }
  0x24   :  { %218 = dma.done.wait [#allocation6], 192  }
  0x25   :  { %219 = vsyncadd [#allocation6], 4294967104  ;;  %v39_v0 = vld [vmem:[#allocation2] sm:$0xff]  ;;  %v40_v1 = vld [vmem:[#allocation2 + $0x8] sm:$0xf]  ;;  %vm66_vm4 = vcmask 1043456   ;;  %v90_v16 = vlaneseq }
  0x26   :  { %v41_v2 = vld [vmem:[#allocation5] sm:$0xff]  ;;  %v42_v3 = vld [vmem:[#allocation5 + $0x8] sm:$0xf]  ;;  %v88_v35 = vld [vmem:[%s286_s2] sm:$0x7]  ;;  %vm108_vm5 = vcmask 1040384  }
  0x27   :  { %v43_v4 = vsub.f32 %v39_v0, %v41_v2  ;;  %v44_v5 = vsub.f32 %v40_v1, %v42_v3  ;;  %v91_v25 = vshrl.u32 %v90_v16, 7  ;;  %s224_s2 = smov [#allocation7]  }
  0x28   :  { %s131_s9 = sshll.u32 %s224_s2, 4  ;;  %s132_s9 = int_to_ptr.vmem [resolvable:$true] %s131_s9 }
  0x29   :  { %v45_v6 = vmul.f32 %v43_v4, %v43_v4  ;;  %v46_v7 = vmul.f32 %v44_v5, %v44_v5  ;;  %v92_v33 = vsub.s32 0, %v91_v25  ;;  %v100_v36 = vsub.s32 2, %v91_v25  ;;  %s194_s11 = scalar_lea.vmem %s132_s9, 128  ;;  %p199_p3 = scmp.lt.s32.totalorder %s132_s9, %s132_s9 }
  0x2a   :  { %v96_v39 = vsub.s32 1, %v91_v25  ;;  %p195_p2 = scmp.ne.s32.totalorder %s132_s9, %s194_s11  ;;  %p200_p4 = scmp.lt.s32.totalorder %s194_s11, %s194_s11 }
  0x2b   :  { %v47_v8 = vadd.f32 1e-06, %v45_v6  ;;  %v48_v9 = vadd.f32 1e-06, %v46_v7  ;;  %v93_v43 = vrot.slane %v88_v35, %v92_v33  ;;  %v101_v45 = vrot.slane %v88_v35, %v100_v36 }
  0x2c   :  { %v97_v48 = vrot.slane %v88_v35, %v96_v39  ;;  %p201_p5 = por %p200_p4, %p199_p3 }
  0x2d   :  { %146 = vrsqrt.f32 %v47_v8  ;;  %vm51_vm0 = vcmp.eq.f32.partialorder %v47_v8, inf  ;;  %v54_v11 = vand.u32 2147483648, %v47_v8  ;;  %vm53_vm1 = vcmp.eq.f32.partialorder %v47_v8, 0.0 }
  0x2e   :  { %148 = vrsqrt.f32 %v48_v9  ;;  %vm58_vm2 = vcmp.eq.f32.partialorder %v48_v9, inf  ;;  %v61_v14 = vand.u32 2147483648, %v48_v9  ;;  %vm60_vm3 = vcmp.eq.f32.partialorder %v48_v9, 0.0  ;;  %p202_p6 = pnand %p201_p5, %p195_p2 }
  0x37   :  { %v147_v10 = vpop.eup %146 }
  0x38   :  { %v149_v12 = vpop.eup %148  ;;  %v50_v13 = vmul.f32 %v147_v10, %v47_v8 }
  0x39   :  { %v57_v15 = vmul.f32 %v149_v12, %v48_v9 }
  0x3a   :  { %v52_v17 = vsel %vm51_vm0, %v47_v8, %v50_v13 }
  0x3b   :  { %v55_v18 = vsel %vm53_vm1, %v54_v11, %v52_v17  ;;  %v59_v19 = vsel %vm58_vm2, %v48_v9, %v57_v15 }
  0x3c   :  { %v62_v20 = vsel %vm60_vm3, %v61_v14, %v59_v19  ;;  %v64_v21 = vcombine.high %v55_v18, %v55_v18  ;;  %v67_v22 = vsel %vm66_vm4, %v55_v18, 0.0 }
  0x3d   :  { %v68_v23 = vrot.slane %v67_v22, 4  ;;  %v81_v24 = vsel %vm66_vm4, %v62_v20, 0.0 }
  0x3e   :  { %v74_v26 = vsel %vm66_vm4, %v64_v21, 0.0  ;;  %v82_v27 = vrot.slane %v81_v24, 4 }
  0x3f   :  { %v69_v28 = vadd.f32 %v68_v23, %v67_v22  ;;  %v75_v29 = vrot.slane %v74_v26, 4 }
  0x40   :  { %v83_v30 = vadd.f32 %v82_v27, %v81_v24 }
  0x41   :  { %v70_v31 = vrot.slane %v69_v28, 2  ;;  %v76_v32 = vadd.f32 %v75_v29, %v74_v26 }
  0x42   :  { %v84_v34 = vrot.slane %v83_v30, 2 }
  0x43   :  { %v71_v37 = vadd.f32 %v70_v31, %v69_v28  ;;  %v77_v38 = vrot.slane %v76_v32, 2 }
  0x44   :  { %v85_v40 = vadd.f32 %v84_v34, %v83_v30 }
  0x45   :  { %v72_v41 = vrot.slane %v71_v37, 1  ;;  %v78_v42 = vadd.f32 %v77_v38, %v76_v32 }
  0x46   :  { %v86_v44 = vrot.slane %v85_v40, 1 }
  0x47   :  { %v73_v46 = vadd.f32 %v72_v41, %v71_v37  ;;  %v79_v47 = vrot.slane %v78_v42, 1 }
  0x48   :  { %v87_v49 = vadd.f32 %v86_v44, %v85_v40 }
  0x49   :  { %v80_v50 = vadd.f32 %v79_v47, %v78_v42  ;;  %v105_v51 = vmul.f32 %v93_v43, %v73_v46 }
  0x4a   :  { %v107_v52 = vmul.f32 %v101_v45, %v87_v49 }
  0x4b   :  { %v106_v53 = vmul.f32 %v97_v48, %v80_v50  ;;  %v109_v54 = vsel %vm108_vm5, %v105_v51, 0.0 }
  0x4c   :  { %v112_v56 = vsel %vm108_vm5, %v107_v52, 0.0 }
  0x4d   :  { %v110_v55 = vsel %vm108_vm5, %v106_v53, 0.0 }
  0x4e   :  { %v111_v57 = vadd.f32 %v110_v55, %v109_v54 }
  0x50   :  { %v113_v58 = vadd.f32 %v112_v56, %v111_v57 }
  0x52   :  { %114 = vadd.xlane.f32.xlu0 %v113_v58 }
  0xdf   :  { %v115_v59 = vpop.xlane.xlu0 %114 }
  0xe0   :  { %v116_v60 = vrot.slane %v115_v59, 4 }
  0xe2   :  { %v117_v61 = vadd.f32 %v116_v60, %v115_v59 }
  0xe4   :  { %v118_v62 = vrot.slane %v117_v61, 2 }
  0xe6   :  { %v119_v63 = vadd.f32 %v118_v62, %v117_v61 }
  0xe8   :  { %v120_v0 = vrot.slane %v119_v63, 1 }
  0xea   :  { %v121_v1 = vadd.f32 %v120_v0, %v119_v63 }
  0xec   :  { %141 = vpush %v121_v1 }
 0x11d   :  { %s142_s10 = spop %141 }
 0x11e   :  { %v123_v2 = vstv %s142_s10 }
 0x11f   :  { %124 = vst [vmem:[#allocation7] sm:$0xff] %v123_v2 }
 0x120   :  { %205 = shalt.err (!%p202_p6)
}
 0x121   :  { %s206_s14 = scalar_lea.hbm %s287_s3, 128 }
 0x122   :  { %p207_p7 = scmp.ne.s32.totalorder %s287_s3, %s206_s14  ;;  %p210_p8 = scmp.lt.u32.totalorder %s206_s14, %s287_s3 }
 0x124   :  { %p212_p9 = pnand %p210_p8, %p207_p7 }
 0x126   :  { %215 = shalt.err (!%p212_p9)
}
 0x127   :  { %134 = dma.vmem_to_hbm [thread:$0]  %s132_s9, 128, %s287_s3, [#allocation4]  }
 0x128   :  { %220 = dma.done.wait [#allocation4], 128  }
 0x129   :  { %221 = vsyncadd [#allocation4], 4294967168 }
 0x12a   :  { %138 = vsyncpa [#allocation3], 1 }
 0x12b   :  { %139 = vsyncpa [#allocation6], 1 }
 0x12c   :  { %140 = vsyncpa [#allocation4], 1 }

</bundles_post_ra>
